<compile_context>
chip_gen: v5e
topology: v5e:2x2
jax: 0.10.0
libtpu: 0.0.40
codegen_flags: <defaults>
</compile_context>

<pallas_src>
import jax
import jax.numpy as jnp
from jax.experimental import pallas as pl
from jax.experimental.pallas import tpu as pltpu

D_IN, H1, H2, D_OUT = 784, 64, 32, 10
LANE = 128


def mlp_kernel(x_ref, w1_ref, b1_ref, w2_ref, b2_ref, w3_ref, b3_ref,
               probs_ref, logits_ref):
    x = x_ref[...]                 # (tb, 784) in the streaming dtype (bf16 default)
    cdt = w2_ref.dtype             # MXU operand dtype (bf16 or f32)

    # fc1 + tanh : (tb,784)@(784,64), f32 accumulation on the MXU.
    h1 = jnp.tanh(
        jnp.dot(x, w1_ref[...], preferred_element_type=jnp.float32) + b1_ref[...])
    # fc2 + tanh : (tb,64)@(64,32)
    h2 = jnp.tanh(
        jnp.dot(h1.astype(cdt), w2_ref[...], preferred_element_type=jnp.float32)
        + b2_ref[...])
    # fc3 logits : (tb,32)@(32,10)
    logits = (jnp.dot(h2.astype(cdt), w3_ref[...], preferred_element_type=jnp.float32)
              + b3_ref[...])
    logits_ref[...] = logits.astype(logits_ref.dtype)

    # Softmax over dim=1 (numerically stable, all-f32 epilogue).
    # NOTE: padded rows of a ragged last tile run exp() on undefined VMEM data;
    # rows are independent and padded-row stores are masked, so this is benign.
    m = jnp.max(logits, axis=1, keepdims=True)
    e = jnp.exp(logits - m)
    denom = jnp.sum(e, axis=1, keepdims=True)
    probs = e * pl.reciprocal(denom, approx=False)   # exact: rows sum to 1 in f32
    probs_ref[...] = probs.astype(probs_ref.dtype)


def mlp_comparison_forward(x, params, *, block_b=None, compute_dtype=jnp.bfloat16):
    """x: (B, 784). Returns (probs, logits) in f32, matching the torch module.

    compute_dtype=jnp.bfloat16 streams x / weights as bf16 (f32 accumulation);
    pass jnp.float32 if strict parity with the f32 torch module is required.
    Weights are expected pre-transposed as (in, out); biases as (1, out) or (out,).
    """
    w1, b1, w2, b2, w3, b3 = params
    B, d_in = x.shape
    assert d_in == D_IN
    itemsize = jnp.dtype(compute_dtype).itemsize

    if block_b is None:
        # 2048-row tiles for 2-byte streams, 1024 for f32: both stay inside the
        # scoped-VMEM defaults (v5e 16 MiB; v6e/v7x 32 MiB) with double-buffered
        # x, resident params and the output buffers.
        block_b = 2048 if itemsize <= 2 else 1024

    if B <= block_b:
        # Guarantee >=2 grid steps when possible so v7x's 2nd TensorCore gets work.
        tb = min(block_b, max(8, 8 * pl.cdiv(pl.cdiv(B, 2), 8)))
    else:
        tb = block_b
    grid = (pl.cdiv(B, tb),)

    # MXU operands in compute_dtype; biases stay f32 (added post-accumulation).
    xc = x.astype(compute_dtype)
    w1c, w2c, w3c = (w.astype(compute_dtype) for w in (w1, w2, w3))
    b1f, b2f, b3f = (b.astype(jnp.float32).reshape(1, -1) for b in (b1, b2, b3))

    def resident(shape):
        # Constant block index -> parameters are DMA'd once and stay in VMEM.
        return pl.BlockSpec(shape, lambda i: (0, 0))

    # Advisory cost estimate; x bytes use the padded lane width (784 -> 896),
    # outputs pad to 128 lanes, params approximated with lane padding.
    d_in_pad = LANE * pl.cdiv(D_IN, LANE)
    param_bytes = itemsize * (D_IN * LANE + H1 * LANE + H2 * LANE) + 3 * 8 * LANE * 4
    cost = pl.CostEstimate(
        flops=2 * B * (D_IN * H1 + H1 * H2 + H2 * D_OUT),
        transcendentals=B * (H1 + H2 + D_OUT),
        bytes_accessed=B * d_in_pad * itemsize + 2 * B * LANE * 4 + param_bytes,
    )

    probs, logits = pl.pallas_call(
        mlp_kernel,
        out_shape=(
            jax.ShapeDtypeStruct((B, D_OUT), jnp.float32),   # softmax output
            jax.ShapeDtypeStruct((B, D_OUT), jnp.float32),   # logits
        ),
        grid=grid,
        in_specs=[
            pl.BlockSpec((tb, D_IN), lambda i: (i, 0)),      # x: streamed per tile
            resident((D_IN, H1)), resident((1, H1)),
            resident((H1, H2)), resident((1, H2)),
            resident((H2, D_OUT)), resident((1, D_OUT)),
        ],
        out_specs=(
            pl.BlockSpec((tb, D_OUT), lambda i: (i, 0)),
            pl.BlockSpec((tb, D_OUT), lambda i: (i, 0)),
        ),
        compiler_params=pltpu.CompilerParams(
            dimension_semantics=("parallel",),               # megacore on v7x
        ),
        cost_estimate=cost,
    )(xc, w1c, b1f, w2c, b2f, w3c, b3f)
    return probs, logits


def init_params(key):
    """Deterministic init mirroring nn.Linear (weights stored transposed: (in, out))."""
    k1, k2, k3, k4, k5, k6 = jax.random.split(key, 6)

    def uniform(k, shape, fan_in):
        bound = 1.0 / jnp.sqrt(fan_in)
        return jax.random.uniform(k, shape, jnp.float32, -bound, bound)

    w1 = uniform(k1, (D_IN, H1), float(D_IN))
    b1 = uniform(k2, (1, H1), float(D_IN))
    w2 = uniform(k3, (H1, H2), float(H1))
    b2 = uniform(k4, (1, H2), float(H1))
    w3 = uniform(k5, (H2, D_OUT), float(H2))
    b3 = uniform(k6, (1, D_OUT), float(H2))
    return (w1, b1, w2, b2, w3, b3)


if __name__ == "__main__":
    key = jax.random.PRNGKey(0)
    kx, kp = jax.random.split(key)
    params = init_params(kp)
    w1, b1, w2, b2, w3, b3 = params

    def reference(xin, dt):
        # Mirrors the kernel's casts: dt MXU operands, f32 accumulation, f32 softmax.
        h1 = jnp.tanh(jnp.dot(xin.astype(dt), w1.astype(dt),
                              preferred_element_type=jnp.float32) + b1)
        h2 = jnp.tanh(jnp.dot(h1.astype(dt), w2.astype(dt),
                              preferred_element_type=jnp.float32) + b2)
        lg = jnp.dot(h2.astype(dt), w3.astype(dt),
                     preferred_element_type=jnp.float32) + b3
        return jax.nn.softmax(lg, axis=1), lg

    # 1) tiny batch (B=2): default bf16 streaming path, single ragged tile.
    x_small = jax.random.normal(kx, (2, D_IN), dtype=jnp.float32)
    probs, logits = mlp_comparison_forward(x_small, params)
    probs, logits = jax.block_until_ready((probs, logits))
    ref_p, ref_l = reference(x_small, jnp.bfloat16)
    assert jnp.allclose(logits, ref_l, atol=1e-3, rtol=1e-3)
    assert jnp.allclose(probs, ref_p, atol=1e-3, rtol=1e-3)
    assert jnp.allclose(jnp.sum(probs, axis=1), 1.0, atol=1e-5)

    # 2) multi-tile grid with a ragged last tile: B=80, 32-row tiles -> 3 steps.
    x_big = jax.random.normal(jax.random.fold_in(kx, 1), (80, D_IN),
                              dtype=jnp.float32)
    probs2, logits2 = mlp_comparison_forward(x_big, params, block_b=32)
    probs2, logits2 = jax.block_until_ready((probs2, logits2))
    ref_p2, ref_l2 = reference(x_big, jnp.bfloat16)
    assert jnp.allclose(logits2, ref_l2, atol=1e-3, rtol=1e-3)
    assert jnp.allclose(probs2, ref_p2, atol=1e-3, rtol=1e-3)
    assert jnp.allclose(jnp.sum(probs2, axis=1), 1.0, atol=1e-5)

    # 3) f32 path (strict-parity option): tolerance covers XLA-vs-Mosaic matmul
    #    precision defaults for f32 operands on the MXU.
    probs3, logits3 = mlp_comparison_forward(x_small, params,
                                             compute_dtype=jnp.float32)
    probs3, logits3 = jax.block_until_ready((probs3, logits3))
    ref_p3, ref_l3 = reference(x_small, jnp.float32)
    assert jnp.allclose(logits3, ref_l3, atol=2e-3, rtol=2e-3)
    assert jnp.allclose(probs3, ref_p3, atol=2e-3, rtol=2e-3)
    assert jnp.allclose(jnp.sum(probs3, axis=1), 1.0, atol=1e-5)

    print("KERNEL_OK")
</pallas_src>

<mosaic_0001>
module attributes {stable_mosaic.version = 11 : i64} {
  func.func @mlp_kernel(%arg0: i32, %arg1: memref<8x784xbf16, #tpu.memory_space<vmem>>, %arg2: memref<784x64xbf16, #tpu.memory_space<vmem>>, %arg3: memref<1x64xf32, #tpu.memory_space<vmem>>, %arg4: memref<64x32xbf16, #tpu.memory_space<vmem>>, %arg5: memref<1x32xf32, #tpu.memory_space<vmem>>, %arg6: memref<32x10xbf16, #tpu.memory_space<vmem>>, %arg7: memref<1x10xf32, #tpu.memory_space<vmem>>, %arg8: memref<8x10xf32, #tpu.memory_space<vmem>>, %arg9: memref<8x10xf32, #tpu.memory_space<vmem>>) attributes {dimension_semantics = [#tpu.dimension_semantics<parallel>], iteration_bounds = array<i64: 1>, scalar_prefetch = 0 : i64, scratch_operands = 0 : i64, tpu.core_type = #tpu.core_type<tc>, window_params = [{transform_indices = @transform_0, window_bounds = array<i64: 8, 784>}, {pipeline_mode = #tpu.pipeline_mode<synchronous>, transform_indices = @transform_1, window_bounds = array<i64: 784, 64>}, {pipeline_mode = #tpu.pipeline_mode<synchronous>, transform_indices = @transform_2, window_bounds = array<i64: 1, 64>}, {pipeline_mode = #tpu.pipeline_mode<synchronous>, transform_indices = @transform_3, window_bounds = array<i64: 64, 32>}, {pipeline_mode = #tpu.pipeline_mode<synchronous>, transform_indices = @transform_4, window_bounds = array<i64: 1, 32>}, {pipeline_mode = #tpu.pipeline_mode<synchronous>, transform_indices = @transform_5, window_bounds = array<i64: 32, 10>}, {pipeline_mode = #tpu.pipeline_mode<synchronous>, transform_indices = @transform_6, window_bounds = array<i64: 1, 10>}, {transform_indices = @transform_7, window_bounds = array<i64: 8, 10>}, {transform_indices = @transform_8, window_bounds = array<i64: 8, 10>}]} {
    %c0 = arith.constant 0 : index
    %c0_0 = arith.constant 0 : index
    %0 = vector.load %arg1[%c0, %c0_0] : memref<8x784xbf16, #tpu.memory_space<vmem>>, vector<8x784xbf16>
    %c0_1 = arith.constant 0 : index
    %c0_2 = arith.constant 0 : index
    %1 = vector.load %arg2[%c0_1, %c0_2] : memref<784x64xbf16, #tpu.memory_space<vmem>>, vector<784x64xbf16>
    %cst = arith.constant dense<0.000000e+00> : vector<8x64xf32>
    %2 = tpu.matmul %0, %1, %cst {dimension_numbers = #tpu.dot_dimension_numbers<[1], [0], [0], [1], [0, 0, 1, 1], [], []>} : vector<8x784xbf16>, vector<784x64xbf16>, vector<8x64xf32> -> vector<8x64xf32>
    %c0_3 = arith.constant 0 : index
    %c0_4 = arith.constant 0 : index
    %3 = vector.load %arg3[%c0_3, %c0_4] : memref<1x64xf32, #tpu.memory_space<vmem>>, vector<1x64xf32>
    %4 = vector.broadcast %3 : vector<1x64xf32> to vector<8x64xf32>
    %5 = arith.addf %2, %4 : vector<8x64xf32>
    %6 = math.tanh %5 : vector<8x64xf32>
    %7 = arith.truncf %6 : vector<8x64xf32> to vector<8x64xbf16>
    %c0_5 = arith.constant 0 : index
    %c0_6 = arith.constant 0 : index
    %8 = vector.load %arg4[%c0_5, %c0_6] : memref<64x32xbf16, #tpu.memory_space<vmem>>, vector<64x32xbf16>
    %cst_7 = arith.constant dense<0.000000e+00> : vector<8x32xf32>
    %9 = tpu.matmul %7, %8, %cst_7 {dimension_numbers = #tpu.dot_dimension_numbers<[1], [0], [0], [1], [0, 0, 1, 1], [], []>} : vector<8x64xbf16>, vector<64x32xbf16>, vector<8x32xf32> -> vector<8x32xf32>
    %c0_8 = arith.constant 0 : index
    %c0_9 = arith.constant 0 : index
    %10 = vector.load %arg5[%c0_8, %c0_9] : memref<1x32xf32, #tpu.memory_space<vmem>>, vector<1x32xf32>
    %11 = vector.broadcast %10 : vector<1x32xf32> to vector<8x32xf32>
    %12 = arith.addf %9, %11 : vector<8x32xf32>
    %13 = math.tanh %12 : vector<8x32xf32>
    %14 = arith.truncf %13 : vector<8x32xf32> to vector<8x32xbf16>
    %c0_10 = arith.constant 0 : index
    %c0_11 = arith.constant 0 : index
    %15 = vector.load %arg6[%c0_10, %c0_11] : memref<32x10xbf16, #tpu.memory_space<vmem>>, vector<32x10xbf16>
    %cst_12 = arith.constant dense<0.000000e+00> : vector<8x10xf32>
    %16 = tpu.matmul %14, %15, %cst_12 {dimension_numbers = #tpu.dot_dimension_numbers<[1], [0], [0], [1], [0, 0, 1, 1], [], []>} : vector<8x32xbf16>, vector<32x10xbf16>, vector<8x10xf32> -> vector<8x10xf32>
    %c0_13 = arith.constant 0 : index
    %c0_14 = arith.constant 0 : index
    %17 = vector.load %arg7[%c0_13, %c0_14] : memref<1x10xf32, #tpu.memory_space<vmem>>, vector<1x10xf32>
    %18 = vector.broadcast %17 : vector<1x10xf32> to vector<8x10xf32>
    %19 = arith.addf %16, %18 : vector<8x10xf32>
    %c0_15 = arith.constant 0 : index
    %c0_16 = arith.constant 0 : index
    %20 = vector.load %arg9[%c0_15, %c0_16] : memref<8x10xf32, #tpu.memory_space<vmem>>, vector<8x10xf32>
    tpu.vector_store %arg9[%c0_15, %c0_16], %19 {strides = array<i32>} : memref<8x10xf32, #tpu.memory_space<vmem>>, vector<8x10xf32>,
    %cst_17 = arith.constant dense<0xFF800000> : vector<8xf32>
    %21 = vector.multi_reduction <maximumf>, %19, %cst_17 [1] : vector<8x10xf32> to vector<8xf32>
    %22 = vector.shape_cast %21 : vector<8xf32> to vector<8x1xf32>
    %23 = vector.broadcast %22 : vector<8x1xf32> to vector<8x10xf32>
    %24 = arith.subf %19, %23 : vector<8x10xf32>
    %25 = math.exp %24 : vector<8x10xf32>
    %cst_18 = arith.constant dense<0.000000e+00> : vector<8xf32>
    %26 = vector.multi_reduction <add>, %25, %cst_18 [1] : vector<8x10xf32> to vector<8xf32>
    %27 = vector.shape_cast %26 : vector<8xf32> to vector<8x1xf32>
    %28 = tpu.reciprocal %27 : vector<8x1xf32> -> vector<8x1xf32>
    %29 = vector.broadcast %28 : vector<8x1xf32> to vector<8x10xf32>
    %30 = arith.mulf %25, %29 : vector<8x10xf32>
    %c0_19 = arith.constant 0 : index
    %c0_20 = arith.constant 0 : index
    %31 = vector.load %arg8[%c0_19, %c0_20] : memref<8x10xf32, #tpu.memory_space<vmem>>, vector<8x10xf32>
    tpu.vector_store %arg8[%c0_19, %c0_20], %30 {strides = array<i32>} : memref<8x10xf32, #tpu.memory_space<vmem>>, vector<8x10xf32>,
    return
  }
  func.func @transform_0(%arg0: i32) -> (i32, i32) {
    %c0_i32 = arith.constant 0 : i32
    %c0_i32_0 = arith.constant 0 : i32
    return %arg0, %c0_i32 : i32, i32
  }
  func.func @transform_1(%arg0: i32) -> (i32, i32) {
    %c0_i32 = arith.constant 0 : i32
    %c0_i32_0 = arith.constant 0 : i32
    %c0_i32_1 = arith.constant 0 : i32
    return %c0_i32, %c0_i32_0 : i32, i32
  }
  func.func @transform_2(%arg0: i32) -> (i32, i32) {
    %c0_i32 = arith.constant 0 : i32
    %c0_i32_0 = arith.constant 0 : i32
    %c0_i32_1 = arith.constant 0 : i32
    return %c0_i32, %c0_i32_0 : i32, i32
  }
  func.func @transform_3(%arg0: i32) -> (i32, i32) {
    %c0_i32 = arith.constant 0 : i32
    %c0_i32_0 = arith.constant 0 : i32
    %c0_i32_1 = arith.constant 0 : i32
    return %c0_i32, %c0_i32_0 : i32, i32
  }
  func.func @transform_4(%arg0: i32) -> (i32, i32) {
    %c0_i32 = arith.constant 0 : i32
    %c0_i32_0 = arith.constant 0 : i32
    %c0_i32_1 = arith.constant 0 : i32
    return %c0_i32, %c0_i32_0 : i32, i32
  }
  func.func @transform_5(%arg0: i32) -> (i32, i32) {
    %c0_i32 = arith.constant 0 : i32
    %c0_i32_0 = arith.constant 0 : i32
    %c0_i32_1 = arith.constant 0 : i32
    return %c0_i32, %c0_i32_0 : i32, i32
  }
  func.func @transform_6(%arg0: i32) -> (i32, i32) {
    %c0_i32 = arith.constant 0 : i32
    %c0_i32_0 = arith.constant 0 : i32
    %c0_i32_1 = arith.constant 0 : i32
    return %c0_i32, %c0_i32_0 : i32, i32
  }
  func.func @transform_7(%arg0: i32) -> (i32, i32) {
    %c0_i32 = arith.constant 0 : i32
    %c0_i32_0 = arith.constant 0 : i32
    return %arg0, %c0_i32 : i32, i32
  }
  func.func @transform_8(%arg0: i32) -> (i32, i32) {
    %c0_i32 = arith.constant 0 : i32
    %c0_i32_0 = arith.constant 0 : i32
    return %arg0, %c0_i32 : i32, i32
  }
}

</mosaic_0001>

<bundles_post_ra>
// kernel: tpu_custom_call.1
= control target key start
LH: loop header
LB: loop body
LE: loop exit
PB: predicated region body
PF: predicated region fallthrough
CT: control target
= control target key end

     0   :  { %14 = vsyncpa [#allocation3], 0  ;;  %s1296_s0 = inlined_call_operand.vmem [shape: bf16[2,784], index: 0, kind: input, shape index: {}]   ;;  %s1297_s1 = inlined_call_operand.vmem [shape: bf16[784,64], index: 1, kind: input, shape index: {}]   ;;  %s1298_s2 = inlined_call_operand.vmem [shape: f32[1,64], index: 2, kind: input, shape index: {}]   ;;  %s1299_s3 = inlined_call_operand.vmem [shape: bf16[64,32], index: 3, kind: input, shape index: {}]   ;;  %s1300_s4 = inlined_call_operand.vmem [shape: f32[1,32], index: 4, kind: input, shape index: {}]   ;;  %s1301_s5 = inlined_call_operand.vmem [shape: bf16[32,10], index: 5, kind: input, shape index: {}]   ;;  %s1302_s6 = inlined_call_operand.vmem [shape: f32[1,10], index: 6, kind: input, shape index: {}]   ;;  %s1303_s7 = inlined_call_operand.hbm [shape: f32[2,10], index: 7, kind: output, shape index: {0}]   ;;  %s1304_s8 = inlined_call_operand.hbm [shape: f32[2,10], index: 8, kind: output, shape index: {1}]  }
   0x1   :  { %15 = vsyncpa [#allocation5], 0  ;;  %v936_v0 = vld [vmem:[%s1297_s1 + $0x38] sm:$0xff]  ;;  %v935_v3 = vld [vmem:[%s1297_s1 + $0x30] sm:$0xff]  ;;  %vm455_vm0 = vcmask 130048   ;;  %vm587_vm1 = vcmask 523264  }
   0x2   :  { %v944_v1 = vld [vmem:[%s1297_s1 + $0x78] sm:$0xff]  ;;  %458 = vmatpush.bf16.msra.mxu0 %v936_v0  ;;  %v943_v4 = vld [vmem:[%s1297_s1 + $0x70] sm:$0xff]  ;;  %v934_v7 = vld [vmem:[%s1297_s1 + $0x28] sm:$0xff]  ;;  %vm626_vm2 = vcmask 261120   ;;  %vm643_vm3 = vcmask 80896  }
   0x3   :  { %v952_v2 = vld [vmem:[%s1297_s1 + $0xb8] sm:$0xff]  ;;  %471 = vmatpush.bf16.msra.mxu1 %v944_v1  ;;  %v951_v5 = vld [vmem:[%s1297_s1 + $0xb0] sm:$0xff]  ;;  %v942_v8 = vld [vmem:[%s1297_s1 + $0x68] sm:$0xff] }
   0x4   :  { %484 = vmatpush.bf16.msra.mxu2 %v952_v2  ;;  %v960_v6 = vld [vmem:[%s1297_s1 + $0xf8] sm:$0xff]  ;;  %v950_v9 = vld [vmem:[%s1297_s1 + $0xa8] sm:$0xff]  ;;  %v959_v10 = vld [vmem:[%s1297_s1 + $0xf0] sm:$0xff] }
   0x5   :  { %497 = vmatpush.bf16.msra.mxu3 %v960_v6  ;;  %v933_v11 = vld [vmem:[%s1297_s1 + $0x20] sm:$0xff]  ;;  %v958_v14 = vld [vmem:[%s1297_s1 + $0xe8] sm:$0xff]  ;;  %v34_v18 = vld [vmem:[%s1296_s0 + $0x15] sm:$0x7f] }
   0x6   :  { %459 = vmatpush.bf16.msra.mxu0 %v935_v3  ;;  %v941_v12 = vld [vmem:[%s1297_s1 + $0x60] sm:$0xff]  ;;  %v33_v17 = vld [vmem:[%s1296_s0 + $0xe] sm:$0x7f]  ;;  %v932_v19 = vld [vmem:[%s1297_s1 + $0x18] sm:$0xff]  ;;  %147 = vst [vmem:[#allocation1 + $0x3] ss:$9 sm:$0xff] %v34_v18 }
   0x7   :  { %472 = vmatpush.bf16.msra.mxu1 %v943_v4  ;;  %v949_v13 = vld [vmem:[%s1297_s1 + $0xa0] sm:$0xff]  ;;  %v940_v20 = vld [vmem:[%s1297_s1 + $0x58] sm:$0xff]  ;;  %144 = vst [vmem:[#allocation1 + $0x2] ss:$9 sm:$0xff] %v33_v17  ;;  %v931_v23 = vld [vmem:[%s1297_s1 + $0x10] sm:$0xff] }
   0x8   :  { %485 = vmatpush.bf16.msra.mxu2 %v951_v5  ;;  %v31_v15 = vld [vmem:[%s1296_s0] sm:$0x7f]  ;;  %v32_v16 = vld [vmem:[%s1296_s0 + $0x7] sm:$0x7f]  ;;  %v948_v21 = vld [vmem:[%s1297_s1 + $0x98] sm:$0xff] }
   0x9   :  { %498 = vmatpush.bf16.msra.mxu3 %v959_v10  ;;  %138 = vst [vmem:[#allocation1] ss:$9 sm:$0xff] %v31_v15  ;;  %v957_v22 = vld [vmem:[%s1297_s1 + $0xe0] sm:$0xff]  ;;  %v939_v24 = vld [vmem:[%s1297_s1 + $0x50] sm:$0xff]  ;;  %v956_v26 = vld [vmem:[%s1297_s1 + $0xd8] sm:$0xff] }
   0xa   :  { %460 = vmatpush.bf16.msra.mxu0 %v934_v7  ;;  %141 = vst [vmem:[#allocation1 + $0x1] ss:$9 sm:$0xff] %v32_v16  ;;  %v947_v25 = vld [vmem:[%s1297_s1 + $0x90] sm:$0xff]  ;;  %v930_v27 = vld [vmem:[%s1297_s1 + $0x8] sm:$0xff]  ;;  %v929_v31 = vld [vmem:[%s1297_s1] sm:$0xff] }
   0xb   :  { %473 = vmatpush.bf16.msra.mxu1 %v942_v8  ;;  %v938_v28 = vld [vmem:[%s1297_s1 + $0x48] sm:$0xff]  ;;  %v955_v30 = vld [vmem:[%s1297_s1 + $0xd0] sm:$0xff]  ;;  %v937_v32 = vld [vmem:[%s1297_s1 + $0x40] sm:$0xff] }
   0xc   :  { %486 = vmatpush.bf16.msra.mxu2 %v950_v9  ;;  %v946_v29 = vld [vmem:[%s1297_s1 + $0x88] sm:$0xff]  ;;  %v968_v33 = vld [vmem:[%s1297_s1 + $0x138] sm:$0xff]  ;;  %v945_v35 = vld [vmem:[%s1297_s1 + $0x80] sm:$0xff] }
   0xd   :  { %499 = vmatpush.bf16.msra.mxu3 %v958_v14  ;;  %v976_v34 = vld [vmem:[%s1297_s1 + $0x178] sm:$0xff]  ;;  %v954_v36 = vld [vmem:[%s1297_s1 + $0xc8] sm:$0xff]  ;;  %v977_v39 = vld [vmem:[%s1297_s1 + $0x180] sm:$0xff] }
   0xe   :  { %461 = vmatpush.bf16.msra.mxu0 %v933_v11  ;;  %v967_v40 = vld [vmem:[%s1297_s1 + $0x130] sm:$0xff]  ;;  %v953_v42 = vld [vmem:[%s1297_s1 + $0xc0] sm:$0xff]  ;;  %v966_v44 = vld [vmem:[%s1297_s1 + $0x128] sm:$0xff] }
   0xf   :  { %474 = vmatpush.bf16.msra.mxu1 %v941_v12  ;;  %v975_v41 = vld [vmem:[%s1297_s1 + $0x170] sm:$0xff]  ;;  %v974_v45 = vld [vmem:[%s1297_s1 + $0x168] sm:$0xff]  ;;  %v965_v47 = vld [vmem:[%s1297_s1 + $0x120] sm:$0xff] }
  0x10   :  { %487 = vmatpush.bf16.msra.mxu2 %v949_v13  ;;  %v973_v48 = vld [vmem:[%s1297_s1 + $0x160] sm:$0xff]  ;;  %v964_v49 = vld [vmem:[%s1297_s1 + $0x118] sm:$0xff]  ;;  %v963_v51 = vld [vmem:[%s1297_s1 + $0x110] sm:$0xff] }
  0x11   :  { %500 = vmatpush.bf16.msra.mxu3 %v957_v22  ;;  %v148_v37 = vld [vmem:[#allocation1] sm:$0xff]  ;;  %v149_v38 = vld [vmem:[#allocation1 + $0x9] sm:$0xff]  ;;  %v150_v43 = vld [vmem:[#allocation1 + $0x12] sm:$0xff] }
  0x12   :  { %462 = vmatpush.bf16.msra.mxu0 %v932_v19  ;;  %v151_v46 = vld [vmem:[#allocation1 + $0x1b] sm:$0xff]  ;;  %v971_v52 = vld [vmem:[%s1297_s1 + $0x150] sm:$0xff]  ;;  %v962_v54 = vld [vmem:[%s1297_s1 + $0x108] sm:$0xff] }
  0x13   :  { %475 = vmatpush.bf16.msra.mxu1 %v940_v20  ;;  %v972_v50 = vld [vmem:[%s1297_s1 + $0x158] sm:$0xff]  ;;  %v970_v55 = vld [vmem:[%s1297_s1 + $0x148] sm:$0xff]  ;;  %v961_v56 = vld [vmem:[%s1297_s1 + $0x100] sm:$0xff] }
  0x14   :  { %488 = vmatpush.bf16.msra.mxu2 %v948_v21  ;;  %v154_v53 = vld [vmem:[#allocation1 + $0x36] sm:$0xff]  ;;  %v969_v57 = vld [vmem:[%s1297_s1 + $0x140] sm:$0xff]  ;;  %v153_v59 = vld [vmem:[#allocation1 + $0x2d] sm:$0xff] }
  0x15   :  { %501 = vmatpush.bf16.msra.mxu3 %v956_v26  ;;  %v152_v58 = vld [vmem:[#allocation1 + $0x24] sm:$0xff]  ;;  %v981_v60 = vld [vmem:[%s1299_s3 + $0x18] sm:$0xff]  ;;  %v980_v63 = vld [vmem:[%s1299_s3 + $0x10] sm:$0xff] }
  0x16   :  { %463 = vmatpush.bf16.msra.mxu0 %v931_v23  ;;  %v979_v0 = vld [vmem:[%s1299_s3 + $0x8] sm:$0xff]  ;;  %v978_v3 = vld [vmem:[%s1299_s3] sm:$0xff] }
  0x17   :  { %476 = vmatpush.bf16.msra.mxu1 %v939_v24  ;;  %v988_v5 = vld [vmem:[%s1298_s2] ss:$0 sm:$0xff]  ;;  %v983_v7 = vld [vmem:[%s1301_s5 + $0x8] sm:$0xff] }
  0x18   :  { %489 = vmatpush.bf16.msra.mxu2 %v947_v25  ;;  %v982_v25 = vld [vmem:[%s1301_s5] sm:$0xff] }
  0x19   :  { %502 = vmatpush.bf16.msra.mxu3 %v955_v30  ;;  %v989_v26 = vld [vmem:[%s1300_s4] ss:$0 sm:$0xff] }
  0x1a   :  { %464 = vmatpush.bf16.msra.mxu0 %v930_v27 }
  0x1b   :  { %477 = vmatpush.bf16.msra.mxu1 %v938_v28 }
  0x1c   :  { %490 = vmatpush.bf16.msra.mxu2 %v946_v29 }
  0x1d   :  { %503 = vmatpush.bf16.msra.mxu3 %v954_v36 }
  0x1e   :  { %465 = vmatpush.bf16.msra.mxu0 %v929_v31 }
  0x1f   :  { %478 = vmatpush.bf16.msra.mxu1 %v937_v32  ;;  %v990_v32 = vld [vmem:[%s1302_s6] ss:$0 sm:$0xff] }
  0x20   :  { %491 = vmatpush.bf16.msra.mxu2 %v945_v35 }
  0x21   :  { %466 = vmatmul.bf16.vlgmr.msra.gmra.mxu0 %v148_v37  ;;  %504 = vmatpush.bf16.msra.mxu3 %v953_v42 }
  0x22   :  { %510 = vmatpush.bf16.msrb.mxu0 %v968_v33  ;;  %479 = vmatmul.bf16.vlgmr.msra.gmra.mxu1 %v149_v38 }
  0x23   :  { %523 = vmatpush.bf16.msrb.mxu1 %v976_v34  ;;  %492 = vmatmul.bf16.vlgmr.msra.gmra.mxu2 %v150_v43 }
  0x24   :  { %543 = vmatpush.bf16.msrb.mxu2 %v977_v39  ;;  %505 = vmatmul.bf16.vlgmr.msra.gmra.mxu3 %v151_v46 }
  0x25   :  { %595 = vmatpush.bf16.msrb.mxu3 %v981_v60 }
  0x26   :  { %511 = vmatpush.bf16.msrb.mxu0 %v967_v40 }
  0x27   :  { %524 = vmatpush.bf16.msrb.mxu1 %v975_v41 }
  0x28   :  { %636 = vmatpush.bf16.msra.mxu2 %v983_v7 }
  0x29   :  { %596 = vmatpush.bf16.msrb.mxu3 %v980_v63 }
  0x2a   :  { %512 = vmatpush.bf16.msrb.mxu0 %v966_v44 }
  0x2b   :  { %525 = vmatpush.bf16.msrb.mxu1 %v974_v45 }
  0x2c   :  { %637 = vmatpush.bf16.msra.mxu2 %v982_v25 }
  0x2d   :  { %597 = vmatpush.bf16.msrb.mxu3 %v979_v0 }
  0x2e   :  { %513 = vmatpush.bf16.msrb.mxu0 %v965_v47 }
  0x2f   :  { %526 = vmatpush.bf16.msrb.mxu1 %v973_v48 }
  0x31   :  { %598 = vmatpush.bf16.msrb.mxu3 %v978_v3 }
  0x32   :  { %514 = vmatpush.bf16.msrb.mxu0 %v964_v49 }
  0x33   :  { %527 = vmatpush.bf16.msrb.mxu1 %v972_v50  ;;  %902 = vmatmul.msk.bf16.vlgmr.msrb.gmra.mxu2 %vm455_vm0, %v154_v53 }
  0x36   :  { %515 = vmatpush.bf16.msrb.mxu0 %v963_v51 }
  0x37   :  { %528 = vmatpush.bf16.msrb.mxu1 %v971_v52 }
  0x3a   :  { %516 = vmatpush.bf16.msrb.mxu0 %v962_v54 }
  0x3b   :  { %529 = vmatpush.bf16.msrb.mxu1 %v970_v55 }
  0x3e   :  { %517 = vmatpush.bf16.msrb.mxu0 %v961_v56 }
  0x3f   :  { %530 = vmatpush.bf16.msrb.mxu1 %v969_v57 }
  0x41   :  { %518 = vmatmul.bf16.vlgmr.msrb.gmra.mxu0 %v152_v58 }
  0x42   :  { %531 = vmatmul.bf16.vlgmr.msrb.gmra.mxu1 %v153_v59 }
  0x9e   :  { %v467_v61 = vpop.f32.mrf.mxu0 }
  0x9f   :  { %v480_v62 = vpop.f32.mrf.mxu1  ;;  %v468_v8 = vadd.f32 %v988_v5, %v467_v61 }
  0xa1   :  { %v481_v10 = vadd.f32 %v480_v62, %v468_v8 }
  0xa6   :  { %v469_v1 = vpop.f32.mrf.mxu0  ;;  %v493_v4 = vpop.f32.mrf.mxu2 }
  0xa7   :  { %v482_v2 = vpop.f32.mrf.mxu1  ;;  %v506_v6 = vpop.f32.mrf.mxu3  ;;  %v494_v12 = vadd.f32 %v493_v4, %v481_v10 }
  0xa9   :  { %v507_v14 = vadd.f32 %v506_v6, %v494_v12 }
  0xae   :  { %v495_v9 = vpop.f32.mrf.mxu2 }
  0xaf   :  { %v508_v11 = vpop.f32.mrf.mxu3 }
  0xb6   :  { %v545_v13 = vpop.f32.mrf.mxu2 }
  0xbe   :  { %v519_v15 = vpop.f32.mrf.mxu0  ;;  %v547_v19 = vpop.f32.mrf.mxu2 }
  0xbf   :  { %v532_v16 = vpop.f32.mrf.mxu1  ;;  %v520_v17 = vadd.f32 %v519_v15, %v507_v14 }
  0xc1   :  { %v533_v18 = vadd.f32 %v532_v16, %v520_v17 }
  0xc3   :  { %v546_v20 = vadd.f32 %v545_v13, %v533_v18 }
  0xc5   :  { %991 = vtanh.f32 %v546_v20 }
  0xc6   :  { %v521_v21 = vpop.f32.mrf.mxu0 }
  0xc7   :  { %v534_v22 = vpop.f32.mrf.mxu1 }
  0xcb   :  { %v992_v23 = vpop.eup %991 }
  0xcc   :  { %v550_v24 = vpack.c.bf16 %v992_v23, %v992_v23 }
  0xce   :  { %919 = vmatmul.msk.bf16.vlgmr.msrb.gmra.mxu3 %vm587_vm1, %v550_v24 }
 0x151   :  { %v600_v27 = vpop.f32.mrf.mxu3 }
 0x152   :  { %v601_v28 = vadd.f32 %v989_v26, %v600_v27 }
 0x154   :  { %993 = vtanh.f32 %v601_v28 }
 0x159   :  { %v602_v29 = vpop.f32.mrf.mxu3 }
 0x15a   :  { %v994_v30 = vpop.eup %993 }
 0x15b   :  { %v605_v31 = vpack.c.bf16 %v994_v30, %v994_v30 }
 0x15d   :  { %928 = vmatmul.msk.bf16.vlgmr.msra.gmra.mxu2 %vm626_vm2, %v605_v31 }
 0x1e0   :  { %v639_v33 = vpop.f32.mrf.mxu2 }
 0x1e1   :  { %v640_v34 = vadd.f32 %v990_v32, %v639_v33 }
 0x1e3   :  { %v645_v35 = vsel %vm643_vm3, %v640_v34, -inf  ;;  %644 = vst.msk [vmem:[#allocation4] sm:$0xff] %vm643_vm3, %v640_v34 }
 0x1e4   :  { %646 = vmax.xlane.f32.xlu0 %v645_v35 }
 0x1e8   :  { %v641_v36 = vpop.f32.mrf.mxu2 }
 0x257   :  { %v647_v37 = vpop.xlane.xlu0 %646 }
 0x258   :  { %v648_v38 = vsub.f32 %v640_v34, %v647_v37 }
 0x25a   :  { %v649_v39 = vmul.f32 1.442695, %v648_v38 }
 0x25c   :  { %995 = vpow2.f32 %v649_v39 }
 0x262   :  { %v996_v40 = vpop.eup %995 }
 0x263   :  { %v651_v41 = vsel %vm643_vm3, %v996_v40, 0.0 }
 0x264   :  { %652 = vadd.xlane.f32.xlu0 %v651_v41 }
 0x2d7   :  { %v653_v42 = vpop.xlane.xlu0 %652 }
 0x2d8   :  { %997 = vrcp.f32 %v653_v42  ;;  %v665_v46 = vand.u32 2147483648, %v653_v42  ;;  %v663_v48 = vand.u32 2147483647, %v653_v42  ;;  %vm659_vm5 = vweird.f32 %v653_v42 }
 0x2da   :  { %v666_v50 = vor.u32 1.1754944e-38, %v665_v46  ;;  %vm664_vm7 = vcmp.eq.f32.partialorder %v663_v48, 8.507059e+37 }
 0x2de   :  { %v998_v43 = vpop.eup %997 }
 0x2df   :  { %v655_v44 = vmul.f32 %v998_v43, %v653_v42  ;;  %vm660_vm4 = vweird.f32 %v998_v43 }
 0x2e0   :  { %vm661_vm6 = vmor %vm659_vm5, %vm660_vm4 }
 0x2e1   :  { %v656_v45 = vsub.f32 1.0, %v655_v44 }
 0x2e3   :  { %v657_v47 = vmul.f32 %v998_v43, %v656_v45 }
 0x2e5   :  { %v658_v49 = vadd.f32 %v998_v43, %v657_v47 }
 0x2e7   :  { %v662_v51 = vsel %vm661_vm6, %v998_v43, %v658_v49 }
 0x2e8   :  { %v667_v52 = vsel %vm664_vm7, %v666_v50, %v662_v51 }
 0x2e9   :  { %v668_v53 = vmul.f32 %v996_v40, %v667_v52 }
 0x2eb   :  { %669 = vst.msk [vmem:[#allocation2] sm:$0xff] %vm643_vm3, %v668_v53 }
 0x2ec   :  { %673 = vsyncadd [#allocation3], 96  ;;  %s676_s6 = sshll.u32 %s1303_s7, 4  ;;  %s1051_s12 = smov [#allocation2]   ;;  %s677_s6 = int_to_ptr.hbm [resolvable:$true] %s676_s6 }
 0x2ed   :  { %s674_s13 = sshll.u32 %s1051_s12, 4  ;;  %s1052_s14 = smov 32   ;;  %s675_s13 = int_to_ptr.vmem [resolvable:$true] %s674_s13 }
 0x2ee   :  { %s1053_s15 = smov 2  }
 0x2ef   :  { %682 = dma.vmem_to_hbm [thread:$0]  %s675_s13, 32, %s677_s6, [#allocation3], %s1052_s14, %s1052_s14, %s1053_s15  }
 0x2f0   :  { %686 = vsyncadd [#allocation5], 96  ;;  %s689_s18 = sshll.u32 %s1304_s8, 4  ;;  %s1054_s19 = smov [#allocation4]   ;;  %s690_s18 = int_to_ptr.hbm [resolvable:$true] %s689_s18 }
 0x2f1   :  { %s687_s20 = sshll.u32 %s1054_s19, 4  ;;  %s688_s20 = int_to_ptr.vmem [resolvable:$true] %s687_s20 }
 0x2f2   :  { %695 = dma.vmem_to_hbm [thread:$0]  %s688_s20, 32, %s690_s18, [#allocation5], %s1052_s14, %s1052_s14, %s1053_s15  }
 0x2f3   :  { %1047 = dma.done.wait [#allocation3], 128  }
 0x2f4   :  { %1048 = vsyncadd [#allocation3], 4294967168 }
 0x2f5   :  { %1049 = dma.done.wait [#allocation5], 128  }
 0x2f6   :  { %1050 = vsyncadd [#allocation5], 4294967168 }
 0x2f7   :  { %704 = vsyncpa [#allocation3], 1 }
 0x2f8   :  { %705 = vsyncpa [#allocation5], 1 }

</bundles_post_ra>
